<compile_context>
chip_gen: v5e
topology: v5e:2x2
jax: 0.10.0
libtpu: 0.0.40
codegen_flags: <defaults>
</compile_context>

<pallas_src>
import functools

import jax
import jax.numpy as jnp
from jax.experimental import pallas as pl
from jax.experimental.pallas import tpu as pltpu

# Module hyper-parameters (not pinned in the snippet; small consistent values).
NUM_INPUTS = 32
HIDDEN_SIZE = 32
NUM_LAYERS = 2
NUM_CLASSES = 10

BATCH = 1000          # deliberately NOT a multiple of TILE_B -> exercises tail handling
TILE_B = 256          # rows per grid step (multiple of 8, MXU-friendly)
LANE = 128            # TPU lane width


def _round_up(n, m):
    return ((n + m - 1) // m) * m


def _make_mlp_kernel(n_linear, out_dims_pad):
    """Fused MLP kernel. Ref order: (x, w0, ..., w_{n-1}, bias_stack, out).

    All feature dims are already lane-padded; weights are (in_pad, out_pad),
    bias_stack is (n_linear, max_out_pad).
    """

    def kernel(x_ref, *refs):
        o_ref = refs[-1]
        b_ref = refs[-2]
        h = x_ref[...]                                   # f32 (tile_b, in_pad)
        for i in range(n_linear):
            w = refs[i][...]                             # (in_pad_i, out_pad_i)
            b = b_ref[i:i + 1, :out_dims_pad[i]]         # (1, out_pad_i) -> row broadcast
            h = jnp.dot(h, w, preferred_element_type=jnp.float32) + b
            if i < n_linear - 1:                         # ReLU after every layer but last
                h = jnp.maximum(h, 0.0)
        o_ref[...] = h.astype(o_ref.dtype)

    return kernel


@functools.partial(jax.jit, static_argnames=("tile_b",))
def neural_net_forward(x, params, *, tile_b=TILE_B):
    """x: (B, NUM_INPUTS) f32; params: list of (W (in,out), b (out,)) f32."""
    B, nin = x.shape
    n_linear = len(params)

    in_dims = [w.shape[0] for w, _ in params]
    out_dims = [w.shape[1] for w, _ in params]
    in_dims_pad = [_round_up(d, LANE) for d in in_dims]
    out_dims_pad = [_round_up(d, LANE) for d in out_dims]
    max_out_pad = max(out_dims_pad)
    out_dim = out_dims[-1]
    out_pad = out_dims_pad[-1]

    # ---- zero-pad batch / feature dims to lane-dense shapes ----------------
    B_pad = _round_up(B, tile_b)
    x_p = jnp.pad(x, ((0, B_pad - B), (0, in_dims_pad[0] - nin)))

    w_pads = []
    b_rows = []
    for li, (w, b) in enumerate(params):
        w_pads.append(jnp.pad(w, ((0, in_dims_pad[li] - in_dims[li]),
                                  (0, out_dims_pad[li] - out_dims[li]))))
        b_rows.append(jnp.pad(b, (0, max_out_pad - out_dims[li])))
    bias_stack = jnp.stack(b_rows, axis=0)               # (n_linear, max_out_pad)

    kernel = _make_mlp_kernel(n_linear, out_dims_pad)
    grid = (pl.cdiv(B_pad, tile_b),)

    # x / out tiled over batch; weights & bias stack fully resident (constant index_map).
    in_specs = [pl.BlockSpec((tile_b, in_dims_pad[0]), lambda i: (i, 0))]
    for w_p in w_pads:
        in_specs.append(pl.BlockSpec(w_p.shape, lambda i: (0, 0)))
    in_specs.append(pl.BlockSpec(bias_stack.shape, lambda i: (0, 0)))
    out_spec = pl.BlockSpec((tile_b, out_pad), lambda i: (i, 0))

    out_padded = pl.pallas_call(
        kernel,
        out_shape=jax.ShapeDtypeStruct((B_pad, out_pad), x.dtype),
        grid_spec=pltpu.PrefetchScalarGridSpec(
            num_scalar_prefetch=0,
            grid=grid,
            in_specs=in_specs,
            out_specs=out_spec,
        ),
        compiler_params=pltpu.CompilerParams(
            dimension_semantics=("parallel",),        # megacore sharding on v7x
            vmem_limit_bytes=32 * 1024 * 1024,        # explicit budget (safe on all chips)
        ),
    )(x_p, *w_pads, bias_stack)

    # TODO(synk): add a K-tiled ("arbitrary") reduction axis once
    # HIDDEN_SIZE * NUM_LAYERS grows past the 64 MiB v7x VMEM budget for this
    # fully-weight-resident design.
    return out_padded[:B, :out_dim]


def init_params(key):
    """Deterministic init mimicking PyTorch Linear default U[-1/sqrt(in), 1/sqrt(in)]."""
    dims = [NUM_INPUTS] + [HIDDEN_SIZE] * NUM_LAYERS + [NUM_CLASSES]
    params = []
    for i in range(len(dims) - 1):
        fan_in, fan_out = dims[i], dims[i + 1]
        key, kw, kb = jax.random.split(key, 3)
        bound = 1.0 / jnp.sqrt(fan_in)
        # stored as (in, out) == PyTorch weight.T, so the kernel computes x @ W + b
        w = jax.random.uniform(kw, (fan_in, fan_out), jnp.float32, -bound, bound)
        b = jax.random.uniform(kb, (fan_out,), jnp.float32, -bound, bound)
        params.append((w, b))
    return params


def reference_forward(x, params):
    h = x
    n = len(params)
    for i, (w, b) in enumerate(params):
        h = h @ w + b
        if i < n - 1:
            h = jnp.maximum(h, 0.0)
    return h


if __name__ == "__main__":
    key = jax.random.PRNGKey(0)
    key, kx = jax.random.split(key)
    x = jax.random.normal(kx, (BATCH, NUM_INPUTS), jnp.float32)
    params = init_params(key)

    out = neural_net_forward(x, params)
    out = jax.block_until_ready(out)

    ref = reference_forward(x, params)
    assert out.shape == (BATCH, NUM_CLASSES), out.shape
    assert jnp.allclose(out, ref, atol=1e-4, rtol=1e-4), "mismatch vs reference"

    print("KERNEL_OK")
</pallas_src>

<mosaic_0001>
module attributes {stable_mosaic.version = 11 : i64} {
  func.func @kernel(%arg0: i32, %arg1: memref<256x128xf32, #tpu.memory_space<vmem>>, %arg2: memref<128x128xf32, #tpu.memory_space<vmem>>, %arg3: memref<128x128xf32, #tpu.memory_space<vmem>>, %arg4: memref<128x128xf32, #tpu.memory_space<vmem>>, %arg5: memref<3x128xf32, #tpu.memory_space<vmem>>, %arg6: memref<256x128xf32, #tpu.memory_space<vmem>>) attributes {dimension_semantics = [#tpu.dimension_semantics<parallel>], iteration_bounds = array<i64: 4>, scalar_prefetch = 0 : i64, scratch_operands = 0 : i64, tpu.core_type = #tpu.core_type<tc>, window_params = [{transform_indices = @transform_0, window_bounds = array<i64: 256, 128>}, {pipeline_mode = #tpu.pipeline_mode<synchronous>, transform_indices = @transform_1, window_bounds = array<i64: 128, 128>}, {pipeline_mode = #tpu.pipeline_mode<synchronous>, transform_indices = @transform_2, window_bounds = array<i64: 128, 128>}, {pipeline_mode = #tpu.pipeline_mode<synchronous>, transform_indices = @transform_3, window_bounds = array<i64: 128, 128>}, {pipeline_mode = #tpu.pipeline_mode<synchronous>, transform_indices = @transform_4, window_bounds = array<i64: 3, 128>}, {transform_indices = @transform_5, window_bounds = array<i64: 256, 128>}]} {
    %c0 = arith.constant 0 : index
    %c0_0 = arith.constant 0 : index
    %0 = vector.load %arg1[%c0, %c0_0] : memref<256x128xf32, #tpu.memory_space<vmem>>, vector<256x128xf32>
    %c0_1 = arith.constant 0 : index
    %c0_2 = arith.constant 0 : index
    %1 = vector.load %arg2[%c0_1, %c0_2] : memref<128x128xf32, #tpu.memory_space<vmem>>, vector<128x128xf32>
    %c0_3 = arith.constant 0 : index
    %c0_4 = arith.constant 0 : index
    %2 = vector.load %arg5[%c0_3, %c0_4] : memref<3x128xf32, #tpu.memory_space<vmem>>, vector<1x128xf32>
    %cst = arith.constant dense<0.000000e+00> : vector<256x128xf32>
    %3 = tpu.matmul %0, %1, %cst {dimension_numbers = #tpu.dot_dimension_numbers<[1], [0], [0], [1], [0, 0, 1, 1], [], []>} : vector<256x128xf32>, vector<128x128xf32>, vector<256x128xf32> -> vector<256x128xf32>
    %4 = vector.broadcast %2 : vector<1x128xf32> to vector<256x128xf32>
    %5 = arith.addf %3, %4 : vector<256x128xf32>
    %cst_5 = arith.constant 0.000000e+00 : f32
    %6 = vector.broadcast %cst_5 : f32 to vector<256x128xf32>
    %7 = arith.maximumf %5, %6 : vector<256x128xf32>
    %c0_6 = arith.constant 0 : index
    %c0_7 = arith.constant 0 : index
    %8 = vector.load %arg3[%c0_6, %c0_7] : memref<128x128xf32, #tpu.memory_space<vmem>>, vector<128x128xf32>
    %c1 = arith.constant 1 : index
    %c0_8 = arith.constant 0 : index
    %9 = vector.load %arg5[%c1, %c0_8] : memref<3x128xf32, #tpu.memory_space<vmem>>, vector<1x128xf32>
    %cst_9 = arith.constant dense<0.000000e+00> : vector<256x128xf32>
    %10 = tpu.matmul %7, %8, %cst_9 {dimension_numbers = #tpu.dot_dimension_numbers<[1], [0], [0], [1], [0, 0, 1, 1], [], []>} : vector<256x128xf32>, vector<128x128xf32>, vector<256x128xf32> -> vector<256x128xf32>
    %11 = vector.broadcast %9 : vector<1x128xf32> to vector<256x128xf32>
    %12 = arith.addf %10, %11 : vector<256x128xf32>
    %cst_10 = arith.constant 0.000000e+00 : f32
    %13 = vector.broadcast %cst_10 : f32 to vector<256x128xf32>
    %14 = arith.maximumf %12, %13 : vector<256x128xf32>
    %c0_11 = arith.constant 0 : index
    %c0_12 = arith.constant 0 : index
    %15 = vector.load %arg4[%c0_11, %c0_12] : memref<128x128xf32, #tpu.memory_space<vmem>>, vector<128x128xf32>
    %c2 = arith.constant 2 : index
    %c0_13 = arith.constant 0 : index
    %16 = vector.load %arg5[%c2, %c0_13] : memref<3x128xf32, #tpu.memory_space<vmem>>, vector<1x128xf32>
    %cst_14 = arith.constant dense<0.000000e+00> : vector<256x128xf32>
    %17 = tpu.matmul %14, %15, %cst_14 {dimension_numbers = #tpu.dot_dimension_numbers<[1], [0], [0], [1], [0, 0, 1, 1], [], []>} : vector<256x128xf32>, vector<128x128xf32>, vector<256x128xf32> -> vector<256x128xf32>
    %18 = vector.broadcast %16 : vector<1x128xf32> to vector<256x128xf32>
    %19 = arith.addf %17, %18 : vector<256x128xf32>
    %c0_15 = arith.constant 0 : index
    %c0_16 = arith.constant 0 : index
    %20 = vector.load %arg6[%c0_15, %c0_16] : memref<256x128xf32, #tpu.memory_space<vmem>>, vector<256x128xf32>
    tpu.vector_store %arg6[%c0_15, %c0_16], %19 {strides = array<i32>} : memref<256x128xf32, #tpu.memory_space<vmem>>, vector<256x128xf32>,
    return
  }
  func.func @transform_0(%arg0: i32) -> (i32, i32) {
    %c0_i32 = arith.constant 0 : i32
    %c0_i32_0 = arith.constant 0 : i32
    return %arg0, %c0_i32 : i32, i32
  }
  func.func @transform_1(%arg0: i32) -> (i32, i32) {
    %c0_i32 = arith.constant 0 : i32
    %c0_i32_0 = arith.constant 0 : i32
    %c0_i32_1 = arith.constant 0 : i32
    return %c0_i32, %c0_i32_0 : i32, i32
  }
  func.func @transform_2(%arg0: i32) -> (i32, i32) {
    %c0_i32 = arith.constant 0 : i32
    %c0_i32_0 = arith.constant 0 : i32
    %c0_i32_1 = arith.constant 0 : i32
    return %c0_i32, %c0_i32_0 : i32, i32
  }
  func.func @transform_3(%arg0: i32) -> (i32, i32) {
    %c0_i32 = arith.constant 0 : i32
    %c0_i32_0 = arith.constant 0 : i32
    %c0_i32_1 = arith.constant 0 : i32
    return %c0_i32, %c0_i32_0 : i32, i32
  }
  func.func @transform_4(%arg0: i32) -> (i32, i32) {
    %c0_i32 = arith.constant 0 : i32
    %c0_i32_0 = arith.constant 0 : i32
    %c0_i32_1 = arith.constant 0 : i32
    return %c0_i32, %c0_i32_0 : i32, i32
  }
  func.func @transform_5(%arg0: i32) -> (i32, i32) {
    %c0_i32 = arith.constant 0 : i32
    %c0_i32_0 = arith.constant 0 : i32
    return %arg0, %c0_i32 : i32, i32
  }
}

</mosaic_0001>

<bundles_post_ra>
// kernel: neural_net_forward.1
= control target key start
LH: loop header
LB: loop body
LE: loop exit
PB: predicated region body
PF: predicated region fallthrough
CT: control target
= control target key end

     0   :  { %s913_s18 = smov 0   ;;  %s1260_s0 = inlined_call_operand.vmem [shape: f32[1024,128], index: 0, kind: input, shape index: {}]   ;;  %s1261_s1 = inlined_call_operand.vmem [shape: f32[128,128], index: 1, kind: input, shape index: {}]   ;;  %s1262_s2 = inlined_call_operand.vmem [shape: f32[128,128], index: 2, kind: input, shape index: {}]   ;;  %s1263_s3 = inlined_call_operand.vmem [shape: f32[128,128], index: 3, kind: input, shape index: {}]   ;;  %s1264_s4 = inlined_call_operand.vmem [shape: f32[3,128], index: 4, kind: input, shape index: {}]   ;;  %s1265_s5 = inlined_call_operand.vmem [shape: f32[1024,128], index: 5, kind: output, shape index: {}]  }
   0x1 LB: > { %s805_s19 = sadd.s32 4294967295, %s881_s18   ;;  %p809_p0 = scmp.ge.s32.totalorder %s881_s18, 1  ;;  %s881_s18 = sphi %s913_s18, %s15_s18  }
   0x2   : > { %p188_p1 = scmp.lt.s32.totalorder %s881_s18, 5 }
   0x4   : > { %p189_p2 = pnand %p809_p0, %p188_p1 }
   0x5   : > { %s810_s11 = sshll.u32 (!%p189_p2), %s805_s19, 5 }
   0x6   : > { %192 = sbr.rel (%p189_p2) target bundleno = 622 (0x26e), region = 40  ;;  %p217_p3 = scmp.lt.s32.totalorder (!%p189_p2), %s810_s11, 127 }
   0xb   : > { %v275_v0 = vld [vmem:[%s1261_s1 + $0x78] sm:$0xff]  ;;  %v274_v1 = vld [vmem:[%s1261_s1 + $0x70] sm:$0xff]  ;;  %v273_v2 = vld [vmem:[%s1261_s1 + $0x68] sm:$0xff]  ;;  %s1267_s11 = smov (!%p217_p3, %s810_s11), 127 }
   0xc   : > { %278 = vmatpush.msra.mxu0 %v275_v0  ;;  %816 = vmatpush.msra.mxu3 %v275_v0  ;;  %v272_v3 = vld [vmem:[%s1261_s1 + $0x60] sm:$0xff]  ;;  %v271_v4 = vld [vmem:[%s1261_s1 + $0x58] sm:$0xff]  ;;  %v270_v5 = vld [vmem:[%s1261_s1 + $0x50] sm:$0xff]  ;;  %s811_s23 = sshll.u32 %s1267_s11, 3 }
   0xd   : > { %v269_v6 = vld [vmem:[%s1261_s1 + $0x48] sm:$0xff]  ;;  %v268_v7 = vld [vmem:[%s1261_s1 + $0x40] sm:$0xff]  ;;  %v267_v8 = vld [vmem:[%s1261_s1 + $0x38] sm:$0xff]  ;;  %s974_s30 = scalar_lea.vmem %s1260_s0, %s811_s23  ;;  %s1181_s16 = scalar_lea.vmem %s1265_s5, %s811_s23 }
   0xe   : > { %279 = vmatpush.msra.mxu0 %v274_v1  ;;  %817 = vmatpush.msra.mxu3 %v274_v1  ;;  %v266_v9 = vld [vmem:[%s1261_s1 + $0x30] sm:$0xff]  ;;  %v265_v10 = vld [vmem:[%s1261_s1 + $0x28] sm:$0xff]  ;;  %v264_v11 = vld [vmem:[%s1261_s1 + $0x20] sm:$0xff] }
   0xf   : > { %v263_v12 = vld [vmem:[%s1261_s1 + $0x18] sm:$0xff]  ;;  %v262_v13 = vld [vmem:[%s1261_s1 + $0x10] sm:$0xff]  ;;  %v261_v14 = vld [vmem:[%s1261_s1 + $0x8] sm:$0xff] }
  0x10   : > { %280 = vmatpush.msra.mxu0 %v273_v2  ;;  %818 = vmatpush.msra.mxu3 %v273_v2  ;;  %v260_v15 = vld [vmem:[%s1261_s1] sm:$0xff]  ;;  %v229_v17 = vld [vmem:[%s974_s30 + $0x8] sm:$0xff]  ;;  %v230_v18 = vld [vmem:[%s974_s30 + $0x10] sm:$0xff] }
  0x11   : > { %v228_v16 = vld [vmem:[%s974_s30] sm:$0xff]  ;;  %v231_v19 = vld [vmem:[%s974_s30 + $0x18] sm:$0xff]  ;;  %v233_v21 = vld [vmem:[%s974_s30 + $0x28] sm:$0xff] }
  0x12   : > { %281 = vmatpush.msra.mxu0 %v272_v3  ;;  %819 = vmatpush.msra.mxu3 %v272_v3  ;;  %v232_v20 = vld [vmem:[%s974_s30 + $0x20] sm:$0xff]  ;;  %v234_v22 = vld [vmem:[%s974_s30 + $0x30] sm:$0xff]  ;;  %v235_v23 = vld [vmem:[%s974_s30 + $0x38] sm:$0xff] }
  0x13   : > { %v236_v24 = vld [vmem:[%s974_s30 + $0x40] sm:$0xff]  ;;  %v438_v25 = vld [vmem:[%s1262_s2 + $0x78] sm:$0xff]  ;;  %v437_v26 = vld [vmem:[%s1262_s2 + $0x70] sm:$0xff] }
  0x14   : > { %282 = vmatpush.msra.mxu0 %v271_v4  ;;  %820 = vmatpush.msra.mxu3 %v271_v4  ;;  %v436_v27 = vld [vmem:[%s1262_s2 + $0x68] sm:$0xff]  ;;  %v435_v29 = vld [vmem:[%s1262_s2 + $0x60] sm:$0xff]  ;;  %v434_v30 = vld [vmem:[%s1262_s2 + $0x58] sm:$0xff] }
  0x15   : > { %441 = vmatpush.msra.mxu1 %v438_v25  ;;  %v237_v28 = vld [vmem:[%s974_s30 + $0x48] sm:$0xff]  ;;  %v433_v31 = vld [vmem:[%s1262_s2 + $0x50] sm:$0xff]  ;;  %v431_v34 = vld [vmem:[%s1262_s2 + $0x40] sm:$0xff] }
  0x16   : > { %283 = vmatpush.msra.mxu0 %v270_v5  ;;  %821 = vmatpush.msra.mxu3 %v270_v5  ;;  %v432_v32 = vld [vmem:[%s1262_s2 + $0x48] sm:$0xff]  ;;  %v238_v33 = vld [vmem:[%s974_s30 + $0x50] sm:$0xff]  ;;  %v430_v35 = vld [vmem:[%s1262_s2 + $0x38] sm:$0xff] }
  0x17   : > { %442 = vmatpush.msra.mxu1 %v437_v26  ;;  %v252_v36 = vld [vmem:[%s974_s30 + $0xc0] sm:$0xff]  ;;  %v429_v37 = vld [vmem:[%s1262_s2 + $0x30] sm:$0xff]  ;;  %v428_v38 = vld [vmem:[%s1262_s2 + $0x28] sm:$0xff] }
  0x18   : > { %284 = vmatpush.msra.mxu0 %v269_v6  ;;  %822 = vmatpush.msra.mxu3 %v269_v6  ;;  %v239_v39 = vld [vmem:[%s974_s30 + $0x58] sm:$0xff]  ;;  %v427_v40 = vld [vmem:[%s1262_s2 + $0x20] sm:$0xff]  ;;  %v253_v42 = vld [vmem:[%s974_s30 + $0xc8] sm:$0xff] }
  0x19   : > { %443 = vmatpush.msra.mxu1 %v436_v27  ;;  %v426_v41 = vld [vmem:[%s1262_s2 + $0x18] sm:$0xff]  ;;  %v425_v43 = vld [vmem:[%s1262_s2 + $0x10] sm:$0xff]  ;;  %v240_v44 = vld [vmem:[%s974_s30 + $0x60] sm:$0xff] }
  0x1a   : > { %285 = vmatpush.msra.mxu0 %v268_v7  ;;  %823 = vmatpush.msra.mxu3 %v268_v7  ;;  %v424_v45 = vld [vmem:[%s1262_s2 + $0x8] sm:$0xff]  ;;  %v423_v46 = vld [vmem:[%s1262_s2] sm:$0xff]  ;;  %v254_v47 = vld [vmem:[%s974_s30 + $0xd0] sm:$0xff] }
  0x1b   : > { %444 = vmatpush.msra.mxu1 %v435_v29  ;;  %v241_v48 = vld [vmem:[%s974_s30 + $0x68] sm:$0xff]  ;;  %v255_v49 = vld [vmem:[%s974_s30 + $0xd8] sm:$0xff]  ;;  %v242_v50 = vld [vmem:[%s974_s30 + $0x70] sm:$0xff] }
  0x1c   : > { %286 = vmatpush.msra.mxu0 %v267_v8  ;;  %824 = vmatpush.msra.mxu3 %v267_v8  ;;  %v256_v51 = vld [vmem:[%s974_s30 + $0xe0] sm:$0xff]  ;;  %v243_v52 = vld [vmem:[%s974_s30 + $0x78] sm:$0xff]  ;;  %v257_v54 = vld [vmem:[%s974_s30 + $0xe8] sm:$0xff] }
  0x1d   : > { %445 = vmatpush.msra.mxu1 %v434_v30  ;;  %v1051_v53 = vld [vmem:[%s1264_s4] ss:$0 sm:$0xff]  ;;  %v258_v59 = vld [vmem:[%s974_s30 + $0xf0] sm:$0xff]  ;;  %v245_v61 = vld [vmem:[%s974_s30 + $0x88] sm:$0xff] }
  0x1e   : > { %287 = vmatpush.msra.mxu0 %v266_v9  ;;  %825 = vmatpush.msra.mxu3 %v266_v9  ;;  %v244_v56 = vld [vmem:[%s974_s30 + $0x80] sm:$0xff]  ;;  %v259_v0 = vld [vmem:[%s974_s30 + $0xf8] sm:$0xff]  ;;  %v246_v2 = vld [vmem:[%s974_s30 + $0x90] sm:$0xff] }
  0x1f   : > { %446 = vmatpush.msra.mxu1 %v433_v31  ;;  %v247_v6 = vld [vmem:[%s974_s30 + $0x98] sm:$0xff] }
  0x20   : > { %288 = vmatpush.msra.mxu0 %v265_v10  ;;  %826 = vmatpush.msra.mxu3 %v265_v10  ;;  %v248_v10 = vld [vmem:[%s974_s30 + $0xa0] sm:$0xff] }
  0x21   : > { %447 = vmatpush.msra.mxu1 %v432_v32 }
  0x22   : > { %289 = vmatpush.msra.mxu0 %v264_v11  ;;  %827 = vmatpush.msra.mxu3 %v264_v11 }
  0x23   : > { %448 = vmatpush.msra.mxu1 %v431_v34 }
  0x24   : > { %290 = vmatpush.msra.mxu0 %v263_v12  ;;  %828 = vmatpush.msra.mxu3 %v263_v12 }
  0x25   : > { %449 = vmatpush.msra.mxu1 %v430_v35 }
  0x26   : > { %291 = vmatpush.msra.mxu0 %v262_v13  ;;  %829 = vmatpush.msra.mxu3 %v262_v13 }
  0x27   : > { %450 = vmatpush.msra.mxu1 %v429_v37 }
  0x28   : > { %292 = vmatpush.msra.mxu0 %v261_v14  ;;  %830 = vmatpush.msra.mxu3 %v261_v14  ;;  %v249_v14 = vld [vmem:[%s974_s30 + $0xa8] sm:$0xff] }
  0x29   : > { %451 = vmatpush.msra.mxu1 %v428_v38 }
  0x2a   : > { %293 = vmatpush.msra.mxu0 %v260_v15  ;;  %831 = vmatpush.msra.mxu3 %v260_v15 }
  0x2b   : > { %294 = vmatmul.f32.vlgmr.msra.gmra.mxu0 %v228_v16  ;;  %366 = vmatmul.f32.vlgmr.msra.gmra.mxu3 %v252_v36 }
  0x2c   : > { %832 = vmatpush.msrb.mxu3 %v438_v25  ;;  %452 = vmatpush.msra.mxu1 %v427_v40 }
  0x2e   : > { %833 = vmatpush.msrb.mxu3 %v437_v26  ;;  %453 = vmatpush.msra.mxu1 %v426_v41 }
  0x30   : > { %834 = vmatpush.msrb.mxu3 %v436_v27  ;;  %454 = vmatpush.msra.mxu1 %v425_v43 }
  0x32   : > { %835 = vmatpush.msrb.mxu3 %v435_v29  ;;  %455 = vmatpush.msra.mxu1 %v424_v45 }
  0x33   : > { %297 = vmatmul.f32.gmra.mxu0 %v229_v17  ;;  %369 = vmatmul.f32.gmra.mxu3 %v253_v42  ;;  %v593_v42 = vld [vmem:[%s1263_s3 + $0x38] sm:$0xff] }
  0x34   : > { %836 = vmatpush.msrb.mxu3 %v434_v30  ;;  %456 = vmatpush.msra.mxu1 %v423_v46 }
  0x36   : > { %837 = vmatpush.msrb.mxu3 %v433_v31  ;;  %v600_v31 = vld [vmem:[%s1263_s3 + $0x70] sm:$0xff] }
  0x38   : > { %838 = vmatpush.msrb.mxu3 %v432_v32 }
  0x3a   : > { %839 = vmatpush.msrb.mxu3 %v431_v34  ;;  %v598_v34 = vld [vmem:[%s1263_s3 + $0x60] sm:$0xff] }
  0x3b   : > { %300 = vmatmul.f32.gmra.mxu0 %v230_v18  ;;  %372 = vmatmul.f32.gmra.mxu3 %v254_v47  ;;  %v250_v18 = vld [vmem:[%s974_s30 + $0xb0] sm:$0xff] }
  0x3c   : > { %840 = vmatpush.msrb.mxu3 %v430_v35  ;;  %v597_v35 = vld [vmem:[%s1263_s3 + $0x58] sm:$0xff] }
  0x3e   : > { %841 = vmatpush.msrb.mxu3 %v429_v37 }
  0x40   : > { %842 = vmatpush.msrb.mxu3 %v428_v38  ;;  %v596_v38 = vld [vmem:[%s1263_s3 + $0x50] sm:$0xff] }
  0x42   : > { %843 = vmatpush.msrb.mxu3 %v427_v40  ;;  %v595_v40 = vld [vmem:[%s1263_s3 + $0x48] sm:$0xff] }
  0x43   : > { %303 = vmatmul.f32.gmra.mxu0 %v231_v19  ;;  %375 = vmatmul.f32.gmra.mxu3 %v255_v49  ;;  %v591_v49 = vld [vmem:[%s1263_s3 + $0x28] sm:$0xff] }
  0x44   : > { %844 = vmatpush.msrb.mxu3 %v426_v41  ;;  %v594_v41 = vld [vmem:[%s1263_s3 + $0x40] sm:$0xff] }
  0x46   : > { %845 = vmatpush.msrb.mxu3 %v425_v43 }
  0x48   : > { %846 = vmatpush.msrb.mxu3 %v424_v45  ;;  %v592_v45 = vld [vmem:[%s1263_s3 + $0x30] sm:$0xff] }
  0x4a   : > { %847 = vmatpush.msrb.mxu3 %v423_v46 }
  0x4b   : > { %306 = vmatmul.f32.gmra.mxu0 %v232_v20  ;;  %378 = vmatmul.f32.gmra.mxu3 %v256_v51  ;;  %v590_v51 = vld [vmem:[%s1263_s3 + $0x20] sm:$0xff] }
  0x53   : > { %309 = vmatmul.f32.gmra.mxu0 %v233_v21  ;;  %381 = vmatmul.f32.gmra.mxu3 %v257_v54 }
  0x5b   : > { %312 = vmatmul.f32.gmra.mxu0 %v234_v22  ;;  %384 = vmatmul.f32.gmra.mxu3 %v258_v59  ;;  %v251_v22 = vld [vmem:[%s974_s30 + $0xb8] sm:$0xff] }
  0x63   : > { %315 = vmatmul.f32.gmra.mxu0 %v235_v23  ;;  %387 = vmatmul.f32.gmra.mxu3 %v259_v0 }
  0x6b   : > { %318 = vmatmul.f32.gmra.mxu0 %v236_v24 }
  0x73   : > { %321 = vmatmul.f32.gmra.mxu0 %v237_v28  ;;  %v601_v28 = vld [vmem:[%s1263_s3 + $0x78] sm:$0xff] }
  0x74   : > { %604 = vmatpush.msra.mxu2 %v601_v28  ;;  %848 = vmatpush.msra.mxu3 %v601_v28 }
  0x76   : > { %605 = vmatpush.msra.mxu2 %v600_v31  ;;  %849 = vmatpush.msra.mxu3 %v600_v31 }
  0x7b   : > { %324 = vmatmul.f32.gmra.mxu0 %v238_v33  ;;  %v599_v33 = vld [vmem:[%s1263_s3 + $0x68] sm:$0xff] }
  0x7c   : > { %606 = vmatpush.msra.mxu2 %v599_v33  ;;  %850 = vmatpush.msra.mxu3 %v599_v33 }
  0x7e   : > { %607 = vmatpush.msra.mxu2 %v598_v34  ;;  %851 = vmatpush.msra.mxu3 %v598_v34 }
  0x80   : > { %608 = vmatpush.msra.mxu2 %v597_v35  ;;  %852 = vmatpush.msra.mxu3 %v597_v35 }
  0x82   : > { %609 = vmatpush.msra.mxu2 %v596_v38  ;;  %853 = vmatpush.msra.mxu3 %v596_v38 }
  0x83   : > { %327 = vmatmul.f32.gmra.mxu0 %v239_v39 }
  0x84   : > { %610 = vmatpush.msra.mxu2 %v595_v40  ;;  %854 = vmatpush.msra.mxu3 %v595_v40 }
  0x86   : > { %611 = vmatpush.msra.mxu2 %v594_v41  ;;  %855 = vmatpush.msra.mxu3 %v594_v41 }
  0x88   : > { %612 = vmatpush.msra.mxu2 %v593_v42  ;;  %856 = vmatpush.msra.mxu3 %v593_v42 }
  0x8a   : > { %613 = vmatpush.msra.mxu2 %v592_v45  ;;  %857 = vmatpush.msra.mxu3 %v592_v45 }
  0x8b   : > { %330 = vmatmul.f32.gmra.mxu0 %v240_v44 }
  0x8c   : > { %614 = vmatpush.msra.mxu2 %v591_v49  ;;  %858 = vmatpush.msra.mxu3 %v591_v49 }
  0x8e   : > { %615 = vmatpush.msra.mxu2 %v590_v51  ;;  %859 = vmatpush.msra.mxu3 %v590_v51 }
  0x93   : > { %333 = vmatmul.f32.gmra.mxu0 %v241_v48 }
  0x9b   : > { %336 = vmatmul.f32.gmra.mxu0 %v242_v50 }
  0xa3   : > { %339 = vmatmul.f32.gmra.mxu0 %v243_v52  ;;  %v589_v52 = vld [vmem:[%s1263_s3 + $0x18] sm:$0xff] }
  0xa4   : > { %616 = vmatpush.msra.mxu2 %v589_v52  ;;  %860 = vmatpush.msra.mxu3 %v589_v52 }
  0xa8   : > { %v295_v55 = vpop.f32.mrf.mxu0 }
  0xa9   : > { %v296_v57 = vadd.f32 %v1051_v53, %v295_v55 }
  0xab   : > { %v391_v58 = vmax.f32 %v296_v57, 0.0  ;;  %342 = vmatmul.f32.gmra.mxu0 %v244_v56  ;;  %v588_v56 = vld [vmem:[%s1263_s3 + $0x10] sm:$0xff] }
  0xac   : > { %617 = vmatpush.msra.mxu2 %v588_v56  ;;  %861 = vmatpush.msra.mxu3 %v588_v56 }
  0xad   : > { %457 = vmatmul.f32.vlgmr.msra.gmra.mxu1 %v391_v58 }
  0xae   : > { %v367_v46 = vpop.f32.mrf.mxu3 }
  0xaf   : > { %v368_v48 = vadd.f32 %v1051_v53, %v367_v46 }
  0xb0   : > { %v298_v60 = vpop.f32.mrf.mxu0 }
  0xb1   : > { %v299_v62 = vadd.f32 %v1051_v53, %v298_v60  ;;  %v415_v50 = vmax.f32 %v368_v48, 0.0  ;;  %v587_v60 = vld [vmem:[%s1263_s3 + $0x8] sm:$0xff] }
  0xb2   : > { %618 = vmatpush.msra.mxu2 %v587_v60  ;;  %862 = vmatpush.msra.mxu3 %v587_v60 }
  0xb3   : > { %v392_v63 = vmax.f32 %v299_v62, 0.0  ;;  %345 = vmatmul.f32.gmra.mxu0 %v245_v61  ;;  %529 = vmatmul.f32.vlgmr.msrb.gmra.mxu3 %v415_v50  ;;  %v586_v62 = vld [vmem:[%s1263_s3] sm:$0xff] }
  0xb4   : > { %619 = vmatpush.msra.mxu2 %v586_v62  ;;  %863 = vmatpush.msra.mxu3 %v586_v62 }
  0xb5   : > { %460 = vmatmul.f32.gmra.mxu1 %v392_v63 }
  0xb6   : > { %v370_v57 = vpop.f32.mrf.mxu3 }
  0xb7   : > { %v371_v59 = vadd.f32 %v1051_v53, %v370_v57 }
  0xb8   : > { %v301_v1 = vpop.f32.mrf.mxu0 }
  0xb9   : > { %v302_v3 = vadd.f32 %v1051_v53, %v301_v1  ;;  %v416_v61 = vmax.f32 %v371_v59, 0.0 }
  0xbb   : > { %v393_v4 = vmax.f32 %v302_v3, 0.0  ;;  %348 = vmatmul.f32.gmra.mxu0 %v246_v2  ;;  %532 = vmatmul.f32.gmra.mxu3 %v416_v61 }
  0xbd   : > { %463 = vmatmul.f32.gmra.mxu1 %v393_v4 }
  0xbe   : > { %v373_v1 = vpop.f32.mrf.mxu3 }
  0xbf   : > { %v374_v3 = vadd.f32 %v1051_v53, %v373_v1 }
  0xc0   : > { %v304_v5 = vpop.f32.mrf.mxu0 }
  0xc1   : > { %v305_v7 = vadd.f32 %v1051_v53, %v304_v5  ;;  %v417_v4 = vmax.f32 %v374_v3, 0.0 }
  0xc3   : > { %v394_v8 = vmax.f32 %v305_v7, 0.0  ;;  %351 = vmatmul.f32.gmra.mxu0 %v247_v6  ;;  %535 = vmatmul.f32.gmra.mxu3 %v417_v4 }
  0xc5   : > { %466 = vmatmul.f32.gmra.mxu1 %v394_v8 }
  0xc6   : > { %v376_v7 = vpop.f32.mrf.mxu3 }
  0xc8   : > { %v307_v9 = vpop.f32.mrf.mxu0 }
  0xc9   : > { %v308_v11 = vadd.f32 %v1051_v53, %v307_v9  ;;  %v377_v9 = vadd.f32 %v1051_v53, %v376_v7 }
  0xcb   : > { %v395_v12 = vmax.f32 %v308_v11, 0.0  ;;  %354 = vmatmul.f32.gmra.mxu0 %v248_v10  ;;  %v418_v10 = vmax.f32 %v377_v9, 0.0 }
  0xcd   : > { %469 = vmatmul.f32.gmra.mxu1 %v395_v12  ;;  %538 = vmatmul.f32.gmra.mxu3 %v418_v10 }
  0xd0   : > { %v310_v13 = vpop.f32.mrf.mxu0 }
  0xd1   : > { %v311_v15 = vadd.f32 %v1051_v53, %v310_v13  ;;  %v379_v13 = vpop.f32.mrf.mxu3 }
  0xd3   : > { %v396_v16 = vmax.f32 %v311_v15, 0.0  ;;  %357 = vmatmul.f32.gmra.mxu0 %v249_v14  ;;  %v380_v15 = vadd.f32 %v1051_v53, %v379_v13 }
  0xd5   : > { %472 = vmatmul.f32.gmra.mxu1 %v396_v16  ;;  %v419_v16 = vmax.f32 %v380_v15, 0.0 }
  0xd7   : > { %541 = vmatmul.f32.gmra.mxu3 %v419_v16 }
  0xd8   : > { %v313_v17 = vpop.f32.mrf.mxu0 }
  0xd9   : > { %v314_v19 = vadd.f32 %v1051_v53, %v313_v17  ;;  %v1136_v17 = vld [vmem:[%s1264_s4 + $0x1] ss:$0 sm:$0xff] }
  0xdb   : > { %v397_v20 = vmax.f32 %v314_v19, 0.0  ;;  %360 = vmatmul.f32.gmra.mxu0 %v250_v18 }
  0xdd   : > { %475 = vmatmul.f32.gmra.mxu1 %v397_v20 }
  0xe0   : > { %v316_v21 = vpop.f32.mrf.mxu0 }
  0xe1   : > { %v317_v23 = vadd.f32 %v1051_v53, %v316_v21  ;;  %v382_v21 = vpop.f32.mrf.mxu3 }
  0xe3   : > { %v398_v24 = vmax.f32 %v317_v23, 0.0  ;;  %363 = vmatmul.f32.gmra.mxu0 %v251_v22 }
  0xe5   : > { %478 = vmatmul.f32.gmra.mxu1 %v398_v24  ;;  %v383_v24 = vadd.f32 %v1051_v53, %v382_v21 }
  0xe8   : > { %v319_v25 = vpop.f32.mrf.mxu0 }
  0xe9   : > { %v320_v26 = vadd.f32 %v1051_v53, %v319_v25 }
  0xeb   : > { %v399_v27 = vmax.f32 %v320_v26, 0.0  ;;  %v420_v26 = vmax.f32 %v383_v24, 0.0 }
  0xed   : > { %481 = vmatmul.f32.gmra.mxu1 %v399_v27  ;;  %544 = vmatmul.f32.gmra.mxu3 %v420_v26 }
  0xf0   : > { %v322_v29 = vpop.f32.mrf.mxu0 }
  0xf1   : > { %v323_v30 = vadd.f32 %v1051_v53, %v322_v29 }
  0xf3   : > { %v400_v32 = vmax.f32 %v323_v30, 0.0  ;;  %v385_v30 = vpop.f32.mrf.mxu3 }
  0xf4   : > { %v386_v33 = vadd.f32 %v1051_v53, %v385_v30 }
  0xf5   : > { %484 = vmatmul.f32.gmra.mxu1 %v400_v32 }
  0xf6   : > { %v421_v35 = vmax.f32 %v386_v33, 0.0 }
  0xf8   : > { %v325_v36 = vpop.f32.mrf.mxu0  ;;  %547 = vmatmul.f32.gmra.mxu3 %v421_v35 }
  0xf9   : > { %v326_v37 = vadd.f32 %v1051_v53, %v325_v36 }
  0xfb   : > { %v401_v39 = vmax.f32 %v326_v37, 0.0 }
  0xfd   : > { %487 = vmatmul.f32.gmra.mxu1 %v401_v39  ;;  %v388_v39 = vpop.f32.mrf.mxu3 }
  0xfe   : > { %v389_v42 = vadd.f32 %v1051_v53, %v388_v39 }
 0x100   : > { %v328_v43 = vpop.f32.mrf.mxu0 }
 0x101   : > { %v329_v44 = vadd.f32 %v1051_v53, %v328_v43 }
 0x103   : > { %v402_v47 = vmax.f32 %v329_v44, 0.0  ;;  %v422_v44 = vmax.f32 %v389_v42, 0.0 }
 0x105   : > { %490 = vmatmul.f32.gmra.mxu1 %v402_v47  ;;  %550 = vmatmul.f32.gmra.mxu3 %v422_v44 }
 0x108   : > { %v331_v54 = vpop.f32.mrf.mxu0 }
 0x109   : > { %v332_v55 = vadd.f32 %v1051_v53, %v331_v54 }
 0x10b   : > { %v403_v58 = vmax.f32 %v332_v55, 0.0 }
 0x10d   : > { %493 = vmatmul.f32.gmra.mxu1 %v403_v58 }
 0x110   : > { %v334_v63 = vpop.f32.mrf.mxu0 }
 0x111   : > { %v335_v0 = vadd.f32 %v1051_v53, %v334_v63 }
 0x113   : > { %v404_v2 = vmax.f32 %v335_v0, 0.0 }
 0x115   : > { %496 = vmatmul.f32.gmra.mxu1 %v404_v2 }
 0x118   : > { %v337_v5 = vpop.f32.mrf.mxu0 }
 0x119   : > { %v338_v6 = vadd.f32 %v1051_v53, %v337_v5 }
 0x11b   : > { %v405_v8 = vmax.f32 %v338_v6, 0.0 }
 0x11d   : > { %499 = vmatmul.f32.gmra.mxu1 %v405_v8 }
 0x120   : > { %v340_v11 = vpop.f32.mrf.mxu0 }
 0x121   : > { %v341_v12 = vadd.f32 %v1051_v53, %v340_v11 }
 0x123   : > { %v406_v14 = vmax.f32 %v341_v12, 0.0 }
 0x125   : > { %502 = vmatmul.f32.gmra.mxu1 %v406_v14 }
 0x128   : > { %v343_v18 = vpop.f32.mrf.mxu0 }
 0x129   : > { %v344_v19 = vadd.f32 %v1051_v53, %v343_v18 }
 0x12a   : > { %v458_v20 = vpop.f32.mrf.mxu1 }
 0x12b   : > { %v407_v22 = vmax.f32 %v344_v19, 0.0  ;;  %v459_v23 = vadd.f32 %v1136_v17, %v458_v20 }
 0x12d   : > { %v554_v25 = vmax.f32 %v459_v23, 0.0  ;;  %505 = vmatmul.f32.gmra.mxu1 %v407_v22 }
 0x12f   : > { %620 = vmatmul.f32.vlgmr.msra.gmra.mxu2 %v554_v25 }
 0x130   : > { %v346_v27 = vpop.f32.mrf.mxu0 }
 0x131   : > { %v347_v28 = vadd.f32 %v1051_v53, %v346_v27 }
 0x132   : > { %v461_v29 = vpop.f32.mrf.mxu1 }
 0x133   : > { %v408_v31 = vmax.f32 %v347_v28, 0.0  ;;  %v462_v32 = vadd.f32 %v1136_v17, %v461_v29 }
 0x135   : > { %v555_v34 = vmax.f32 %v462_v32, 0.0  ;;  %508 = vmatmul.f32.gmra.mxu1 %v408_v31 }
 0x136   : > { %v530_v25 = vpop.f32.mrf.mxu3 }
 0x137   : > { %623 = vmatmul.f32.gmra.mxu2 %v555_v34  ;;  %v531_v27 = vadd.f32 %v1136_v17, %v530_v25 }
 0x138   : > { %v349_v36 = vpop.f32.mrf.mxu0 }
 0x139   : > { %v350_v37 = vadd.f32 %v1051_v53, %v349_v36  ;;  %v578_v29 = vmax.f32 %v531_v27, 0.0 }
 0x13a   : > { %v464_v38 = vpop.f32.mrf.mxu1 }
 0x13b   : > { %v409_v40 = vmax.f32 %v350_v37, 0.0  ;;  %v465_v41 = vadd.f32 %v1136_v17, %v464_v38  ;;  %692 = vmatmul.f32.vlgmr.msra.gmra.mxu3 %v578_v29 }
 0x13d   : > { %v556_v43 = vmax.f32 %v465_v41, 0.0  ;;  %511 = vmatmul.f32.gmra.mxu1 %v409_v40 }
 0x13e   : > { %v533_v31 = vpop.f32.mrf.mxu3 }
 0x13f   : > { %626 = vmatmul.f32.gmra.mxu2 %v556_v43  ;;  %v534_v33 = vadd.f32 %v1136_v17, %v533_v31 }
 0x140   : > { %v352_v45 = vpop.f32.mrf.mxu0 }
 0x141   : > { %v353_v46 = vadd.f32 %v1051_v53, %v352_v45  ;;  %v579_v35 = vmax.f32 %v534_v33, 0.0 }
 0x142   : > { %v467_v47 = vpop.f32.mrf.mxu1 }
 0x143   : > { %v410_v48 = vmax.f32 %v353_v46, 0.0  ;;  %v468_v49 = vadd.f32 %v1136_v17, %v467_v47  ;;  %695 = vmatmul.f32.gmra.mxu3 %v579_v35 }
 0x145   : > { %v557_v50 = vmax.f32 %v468_v49, 0.0  ;;  %514 = vmatmul.f32.gmra.mxu1 %v410_v48 }
 0x146   : > { %v536_v37 = vpop.f32.mrf.mxu3 }
 0x147   : > { %629 = vmatmul.f32.gmra.mxu2 %v557_v50  ;;  %v537_v39 = vadd.f32 %v1136_v17, %v536_v37 }
 0x148   : > { %v355_v51 = vpop.f32.mrf.mxu0 }
 0x149   : > { %v356_v52 = vadd.f32 %v1051_v53, %v355_v51  ;;  %v580_v41 = vmax.f32 %v537_v39, 0.0 }
 0x14a   : > { %v470_v54 = vpop.f32.mrf.mxu1 }
 0x14b   : > { %v411_v55 = vmax.f32 %v356_v52, 0.0  ;;  %v471_v56 = vadd.f32 %v1136_v17, %v470_v54  ;;  %698 = vmatmul.f32.gmra.mxu3 %v580_v41 }
 0x14d   : > { %v558_v57 = vmax.f32 %v471_v56, 0.0  ;;  %517 = vmatmul.f32.gmra.mxu1 %v411_v55  ;;  %v1174_v55 = vld [vmem:[%s1264_s4 + $0x2] ss:$0 sm:$0xff] }
 0x14f   : > { %632 = vmatmul.f32.gmra.mxu2 %v558_v57 }
 0x150   : > { %v358_v58 = vpop.f32.mrf.mxu0  ;;  %v539_v43 = vpop.f32.mrf.mxu3 }
 0x151   : > { %v359_v59 = vadd.f32 %v1051_v53, %v358_v58  ;;  %v540_v45 = vadd.f32 %v1136_v17, %v539_v43 }
 0x152   : > { %v473_v60 = vpop.f32.mrf.mxu1 }
 0x153   : > { %v412_v61 = vmax.f32 %v359_v59, 0.0  ;;  %v474_v62 = vadd.f32 %v1136_v17, %v473_v60  ;;  %v581_v47 = vmax.f32 %v540_v45, 0.0 }
 0x155   : > { %v559_v63 = vmax.f32 %v474_v62, 0.0  ;;  %520 = vmatmul.f32.gmra.mxu1 %v412_v61  ;;  %701 = vmatmul.f32.gmra.mxu3 %v581_v47 }
 0x157   : > { %635 = vmatmul.f32.gmra.mxu2 %v559_v63 }
 0x158   : > { %v361_v0 = vpop.f32.mrf.mxu0 }
 0x159   : > { %v362_v1 = vadd.f32 %v1051_v53, %v361_v0 }
 0x15a   : > { %v476_v2 = vpop.f32.mrf.mxu1  ;;  %v542_v49 = vpop.f32.mrf.mxu3 }
 0x15b   : > { %v413_v3 = vmax.f32 %v362_v1, 0.0  ;;  %v477_v4 = vadd.f32 %v1136_v17, %v476_v2  ;;  %v543_v51 = vadd.f32 %v1136_v17, %v542_v49 }
 0x15d   : > { %v560_v5 = vmax.f32 %v477_v4, 0.0  ;;  %523 = vmatmul.f32.gmra.mxu1 %v413_v3  ;;  %v582_v54 = vmax.f32 %v543_v51, 0.0 }
 0x15f   : > { %638 = vmatmul.f32.gmra.mxu2 %v560_v5  ;;  %704 = vmatmul.f32.gmra.mxu3 %v582_v54 }
 0x160   : > { %v364_v6 = vpop.f32.mrf.mxu0 }
 0x161   : > { %v365_v7 = vadd.f32 %v1051_v53, %v364_v6 }
 0x162   : > { %v479_v8 = vpop.f32.mrf.mxu1 }
 0x163   : > { %v414_v9 = vmax.f32 %v365_v7, 0.0  ;;  %v480_v10 = vadd.f32 %v1136_v17, %v479_v8 }
 0x165   : > { %v561_v11 = vmax.f32 %v480_v10, 0.0  ;;  %526 = vmatmul.f32.gmra.mxu1 %v414_v9 }
 0x167   : > { %641 = vmatmul.f32.gmra.mxu2 %v561_v11 }
 0x16a   : > { %v482_v12 = vpop.f32.mrf.mxu1 }
 0x16b   : > { %v483_v13 = vadd.f32 %v1136_v17, %v482_v12 }
 0x16d   : > { %v562_v14 = vmax.f32 %v483_v13, 0.0 }
 0x16f   : > { %644 = vmatmul.f32.gmra.mxu2 %v562_v14 }
 0x170   : > { %v545_v60 = vpop.f32.mrf.mxu3 }
 0x171   : > { %v546_v61 = vadd.f32 %v1136_v17, %v545_v60 }
 0x172   : > { %v485_v15 = vpop.f32.mrf.mxu1 }
 0x173   : > { %v486_v16 = vadd.f32 %v1136_v17, %v485_v15  ;;  %v583_v63 = vmax.f32 %v546_v61, 0.0 }
 0x175   : > { %v563_v18 = vmax.f32 %v486_v16, 0.0  ;;  %707 = vmatmul.f32.gmra.mxu3 %v583_v63 }
 0x177   : > { %647 = vmatmul.f32.gmra.mxu2 %v563_v18 }
 0x17a   : > { %v488_v19 = vpop.f32.mrf.mxu1 }
 0x17b   : > { %v489_v53 = vadd.f32 %v1136_v17, %v488_v19  ;;  %v548_v4 = vpop.f32.mrf.mxu3 }
 0x17c   : > { %v549_v5 = vadd.f32 %v1136_v17, %v548_v4 }
 0x17d   : > { %v564_v20 = vmax.f32 %v489_v53, 0.0 }
 0x17e   : > { %v584_v7 = vmax.f32 %v549_v5, 0.0 }
 0x17f   : > { %650 = vmatmul.f32.gmra.mxu2 %v564_v20 }
 0x180   : > { %710 = vmatmul.f32.gmra.mxu3 %v584_v7 }
 0x182   : > { %v491_v21 = vpop.f32.mrf.mxu1 }
 0x183   : > { %v492_v22 = vadd.f32 %v1136_v17, %v491_v21 }
 0x185   : > { %v565_v23 = vmax.f32 %v492_v22, 0.0 }
 0x187   : > { %653 = vmatmul.f32.gmra.mxu2 %v565_v23 }
 0x188   : > { %v551_v12 = vpop.f32.mrf.mxu3 }
 0x189   : > { %v552_v13 = vadd.f32 %v1136_v17, %v551_v12 }
 0x18a   : > { %v494_v24 = vpop.f32.mrf.mxu1 }
 0x18b   : > { %v495_v26 = vadd.f32 %v1136_v17, %v494_v24  ;;  %v585_v15 = vmax.f32 %v552_v13, 0.0 }
 0x18d   : > { %v566_v28 = vmax.f32 %v495_v26, 0.0  ;;  %713 = vmatmul.f32.gmra.mxu3 %v585_v15 }
 0x18f   : > { %656 = vmatmul.f32.gmra.mxu2 %v566_v28 }
 0x192   : > { %v497_v30 = vpop.f32.mrf.mxu1 }
 0x193   : > { %v498_v32 = vadd.f32 %v1136_v17, %v497_v30 }
 0x195   : > { %v567_v34 = vmax.f32 %v498_v32, 0.0 }
 0x197   : > { %659 = vmatmul.f32.gmra.mxu2 %v567_v34 }
 0x19a   : > { %v500_v36 = vpop.f32.mrf.mxu1 }
 0x19b   : > { %v501_v38 = vadd.f32 %v1136_v17, %v500_v36 }
 0x19d   : > { %v568_v40 = vmax.f32 %v501_v38, 0.0 }
 0x19f   : > { %662 = vmatmul.f32.gmra.mxu2 %v568_v40 }
 0x1a2   : > { %v503_v42 = vpop.f32.mrf.mxu1 }
 0x1a3   : > { %v504_v44 = vadd.f32 %v1136_v17, %v503_v42 }
 0x1a5   : > { %v569_v46 = vmax.f32 %v504_v44, 0.0 }
 0x1a7   : > { %665 = vmatmul.f32.gmra.mxu2 %v569_v46 }
 0x1aa   : > { %v506_v48 = vpop.f32.mrf.mxu1 }
 0x1ab   : > { %v507_v50 = vadd.f32 %v1136_v17, %v506_v48 }
 0x1ad   : > { %v570_v52 = vmax.f32 %v507_v50, 0.0 }
 0x1af   : > { %668 = vmatmul.f32.gmra.mxu2 %v570_v52 }
 0x1b2   : > { %v509_v56 = vpop.f32.mrf.mxu1  ;;  %v621_v57 = vpop.f32.mrf.mxu2 }
 0x1b3   : > { %v510_v58 = vadd.f32 %v1136_v17, %v509_v56  ;;  %v622_v59 = vadd.f32 %v1174_v55, %v621_v57 }
 0x1b5   : > { %v571_v62 = vmax.f32 %v510_v58, 0.0  ;;  %717 = vst [vmem:[%s1181_s16] sm:$0xff] %v622_v59 }
 0x1b7   : > { %671 = vmatmul.f32.gmra.mxu2 %v571_v62 }
 0x1ba   : > { %v512_v0 = vpop.f32.mrf.mxu1  ;;  %v624_v1 = vpop.f32.mrf.mxu2 }
 0x1bb   : > { %v513_v2 = vadd.f32 %v1136_v17, %v512_v0  ;;  %v625_v3 = vadd.f32 %v1174_v55, %v624_v1 }
 0x1bd   : > { %v572_v6 = vmax.f32 %v513_v2, 0.0  ;;  %718 = vst [vmem:[%s1181_s16 + $0x8] sm:$0xff] %v625_v3 }
 0x1be   : > { %v693_v46 = vpop.f32.mrf.mxu3 }
 0x1bf   : > { %674 = vmatmul.f32.gmra.mxu2 %v572_v6  ;;  %v694_v48 = vadd.f32 %v1174_v55, %v693_v46 }
 0x1c1   : > { %741 = vst [vmem:[%s1181_s16 + $0xc0] sm:$0xff] %v694_v48 }
 0x1c2   : > { %v515_v8 = vpop.f32.mrf.mxu1  ;;  %v627_v9 = vpop.f32.mrf.mxu2 }
 0x1c3   : > { %v516_v10 = vadd.f32 %v1136_v17, %v515_v8  ;;  %v628_v11 = vadd.f32 %v1174_v55, %v627_v9 }
 0x1c5   : > { %v573_v14 = vmax.f32 %v516_v10, 0.0  ;;  %719 = vst [vmem:[%s1181_s16 + $0x10] sm:$0xff] %v628_v11 }
 0x1c6   : > { %v696_v50 = vpop.f32.mrf.mxu3 }
 0x1c7   : > { %677 = vmatmul.f32.gmra.mxu2 %v573_v14  ;;  %v697_v52 = vadd.f32 %v1174_v55, %v696_v50 }
 0x1c9   : > { %742 = vst [vmem:[%s1181_s16 + $0xc8] sm:$0xff] %v697_v52 }
 0x1ca   : > { %v518_v16 = vpop.f32.mrf.mxu1  ;;  %v630_v18 = vpop.f32.mrf.mxu2 }
 0x1cb   : > { %v519_v19 = vadd.f32 %v1136_v17, %v518_v16  ;;  %v631_v53 = vadd.f32 %v1174_v55, %v630_v18 }
 0x1cd   : > { %v574_v20 = vmax.f32 %v519_v19, 0.0  ;;  %720 = vst [vmem:[%s1181_s16 + $0x18] sm:$0xff] %v631_v53 }
 0x1ce   : > { %v699_v56 = vpop.f32.mrf.mxu3 }
 0x1cf   : > { %680 = vmatmul.f32.gmra.mxu2 %v574_v20  ;;  %v700_v58 = vadd.f32 %v1174_v55, %v699_v56 }
 0x1d1   : > { %743 = vst [vmem:[%s1181_s16 + $0xd0] sm:$0xff] %v700_v58 }
 0x1d2   : > { %v521_v21 = vpop.f32.mrf.mxu1  ;;  %v633_v22 = vpop.f32.mrf.mxu2 }
 0x1d3   : > { %v522_v23 = vadd.f32 %v1136_v17, %v521_v21  ;;  %v634_v24 = vadd.f32 %v1174_v55, %v633_v22 }
 0x1d5   : > { %v575_v25 = vmax.f32 %v522_v23, 0.0  ;;  %721 = vst [vmem:[%s1181_s16 + $0x20] sm:$0xff] %v634_v24 }
 0x1d7   : > { %683 = vmatmul.f32.gmra.mxu2 %v575_v25 }
 0x1d8   : > { %v702_v60 = vpop.f32.mrf.mxu3 }
 0x1d9   : > { %v703_v62 = vadd.f32 %v1174_v55, %v702_v60 }
 0x1da   : > { %v524_v26 = vpop.f32.mrf.mxu1  ;;  %v636_v27 = vpop.f32.mrf.mxu2 }
 0x1db   : > { %v525_v28 = vadd.f32 %v1136_v17, %v524_v26  ;;  %v637_v29 = vadd.f32 %v1174_v55, %v636_v27  ;;  %744 = vst [vmem:[%s1181_s16 + $0xd8] sm:$0xff] %v703_v62 }
 0x1dd   : > { %v576_v30 = vmax.f32 %v525_v28, 0.0  ;;  %722 = vst [vmem:[%s1181_s16 + $0x28] sm:$0xff] %v637_v29 }
 0x1df   : > { %686 = vmatmul.f32.gmra.mxu2 %v576_v30 }
 0x1e2   : > { %v527_v31 = vpop.f32.mrf.mxu1  ;;  %v639_v32 = vpop.f32.mrf.mxu2 }
 0x1e3   : > { %v528_v33 = vadd.f32 %v1136_v17, %v527_v31  ;;  %v640_v34 = vadd.f32 %v1174_v55, %v639_v32  ;;  %v705_v0 = vpop.f32.mrf.mxu3 }
 0x1e4   : > { %v706_v2 = vadd.f32 %v1174_v55, %v705_v0 }
 0x1e5   : > { %v577_v35 = vmax.f32 %v528_v33, 0.0  ;;  %723 = vst [vmem:[%s1181_s16 + $0x30] sm:$0xff] %v640_v34 }
 0x1e6   : > { %745 = vst [vmem:[%s1181_s16 + $0xe0] sm:$0xff] %v706_v2 }
 0x1e7   : > { %689 = vmatmul.f32.gmra.mxu2 %v577_v35 }
 0x1ea   : > { %v642_v36 = vpop.f32.mrf.mxu2 }
 0x1eb   : > { %v643_v37 = vadd.f32 %v1174_v55, %v642_v36 }
 0x1ed   : > { %724 = vst [vmem:[%s1181_s16 + $0x38] sm:$0xff] %v643_v37 }
 0x1f2   : > { %v645_v38 = vpop.f32.mrf.mxu2 }
 0x1f3   : > { %v646_v39 = vadd.f32 %v1174_v55, %v645_v38 }
 0x1f5   : > { %725 = vst [vmem:[%s1181_s16 + $0x40] sm:$0xff] %v646_v39 }
 0x1f8   : > { %v708_v5 = vpop.f32.mrf.mxu3 }
 0x1f9   : > { %v709_v6 = vadd.f32 %v1174_v55, %v708_v5 }
 0x1fa   : > { %v648_v40 = vpop.f32.mrf.mxu2 }
 0x1fb   : > { %v649_v17 = vadd.f32 %v1174_v55, %v648_v40  ;;  %746 = vst [vmem:[%s1181_s16 + $0xe8] sm:$0xff] %v709_v6 }
 0x1fd   : > { %726 = vst [vmem:[%s1181_s16 + $0x48] sm:$0xff] %v649_v17 }
 0x202   : > { %v651_v41 = vpop.f32.mrf.mxu2 }
 0x203   : > { %v652_v42 = vadd.f32 %v1174_v55, %v651_v41  ;;  %v711_v9 = vpop.f32.mrf.mxu3 }
 0x204   : > { %v712_v10 = vadd.f32 %v1174_v55, %v711_v9 }
 0x205   : > { %727 = vst [vmem:[%s1181_s16 + $0x50] sm:$0xff] %v652_v42 }
 0x206   : > { %747 = vst [vmem:[%s1181_s16 + $0xf0] sm:$0xff] %v712_v10 }
 0x20a   : > { %v654_v43 = vpop.f32.mrf.mxu2 }
 0x20b   : > { %v655_v44 = vadd.f32 %v1174_v55, %v654_v43 }
 0x20d   : > { %728 = vst [vmem:[%s1181_s16 + $0x58] sm:$0xff] %v655_v44 }
 0x210   : > { %v714_v13 = vpop.f32.mrf.mxu3 }
 0x211   : > { %v715_v14 = vadd.f32 %v1174_v55, %v714_v13 }
 0x212   : > { %v657_v45 = vpop.f32.mrf.mxu2 }
 0x213   : > { %v658_v47 = vadd.f32 %v1174_v55, %v657_v45  ;;  %748 = vst [vmem:[%s1181_s16 + $0xf8] sm:$0xff] %v715_v14 }
 0x215   : > { %729 = vst [vmem:[%s1181_s16 + $0x60] sm:$0xff] %v658_v47 }
 0x21a   : > { %v660_v49 = vpop.f32.mrf.mxu2 }
 0x21b   : > { %v661_v51 = vadd.f32 %v1174_v55, %v660_v49 }
 0x21d   : > { %730 = vst [vmem:[%s1181_s16 + $0x68] sm:$0xff] %v661_v51 }
 0x222   : > { %v663_v54 = vpop.f32.mrf.mxu2 }
 0x223   : > { %v664_v57 = vadd.f32 %v1174_v55, %v663_v54 }
 0x225   : > { %731 = vst [vmem:[%s1181_s16 + $0x70] sm:$0xff] %v664_v57 }
 0x22a   : > { %v666_v59 = vpop.f32.mrf.mxu2 }
 0x22b   : > { %v667_v61 = vadd.f32 %v1174_v55, %v666_v59 }
 0x22d   : > { %732 = vst [vmem:[%s1181_s16 + $0x78] sm:$0xff] %v667_v61 }
 0x232   : > { %v669_v63 = vpop.f32.mrf.mxu2 }
 0x233   : > { %v670_v1 = vadd.f32 %v1174_v55, %v669_v63 }
 0x235   : > { %733 = vst [vmem:[%s1181_s16 + $0x80] sm:$0xff] %v670_v1 }
 0x23a   : > { %v672_v3 = vpop.f32.mrf.mxu2 }
 0x23b   : > { %v673_v4 = vadd.f32 %v1174_v55, %v672_v3 }
 0x23d   : > { %734 = vst [vmem:[%s1181_s16 + $0x88] sm:$0xff] %v673_v4 }
 0x242   : > { %v675_v7 = vpop.f32.mrf.mxu2 }
 0x243   : > { %v676_v8 = vadd.f32 %v1174_v55, %v675_v7 }
 0x245   : > { %735 = vst [vmem:[%s1181_s16 + $0x90] sm:$0xff] %v676_v8 }
 0x24a   : > { %v678_v11 = vpop.f32.mrf.mxu2 }
 0x24b   : > { %v679_v12 = vadd.f32 %v1174_v55, %v678_v11 }
 0x24d   : > { %736 = vst [vmem:[%s1181_s16 + $0x98] sm:$0xff] %v679_v12 }
 0x252   : > { %v681_v15 = vpop.f32.mrf.mxu2 }
 0x253   : > { %v682_v16 = vadd.f32 %v1174_v55, %v681_v15 }
 0x255   : > { %737 = vst [vmem:[%s1181_s16 + $0xa0] sm:$0xff] %v682_v16 }
 0x25a   : > { %v684_v18 = vpop.f32.mrf.mxu2 }
 0x25b   : > { %v685_v19 = vadd.f32 %v1174_v55, %v684_v18 }
 0x25d   : > { %738 = vst [vmem:[%s1181_s16 + $0xa8] sm:$0xff] %v685_v19 }
 0x262   : > { %v687_v53 = vpop.f32.mrf.mxu2 }
 0x263   : > { %v688_v20 = vadd.f32 %v1174_v55, %v687_v53 }
 0x265   : > { %739 = vst [vmem:[%s1181_s16 + $0xb0] sm:$0xff] %v688_v20 }
 0x26a   : > { %v690_v21 = vpop.f32.mrf.mxu2 }
 0x26b   : > { %v691_v22 = vadd.f32 %v1174_v55, %v690_v21 }
 0x26d   : > { %740 = vst [vmem:[%s1181_s16 + $0xb8] sm:$0xff] %v691_v22 }
 0x26e PF: > { %s15_s18 = sadd.s32 1, %s881_s18  }
 0x26f   : > { %p12_p4 = scmp.ge.s32.totalorder %s15_s18, 6  }
 0x271   :  { %14 = sbr.rel (!%p12_p4) target bundleno = 1 (0x1), region = 70 }

</bundles_post_ra>
